<compile_context>
chip_gen: v6e
topology: v6e:2x2x1
jax: 0.10.0
libtpu: 0.0.40
codegen_flags: <defaults>
</compile_context>

<pallas_src>
import functools
import math

import numpy as np

import jax
import jax.numpy as jnp
from jax.experimental import pallas as pl
from jax.experimental.pallas import tpu as pltpu

CLASS_NUM = 32
ILLEGAL_MAX_NUM = 12

# loss hyper-parameters (reference defaults)
MARGIN_RATIO = 0.1
ZERO_MARGIN_SCALE = 0.1
LAMBDA_ENTROPY = 0.2
LAMBDA_LOCAL = 0.2
LAMBDA_MAX = 0.0            # dead in the reference; gated with a Python `if`
GRID_SIZE = 4
PRESENCE_THRESHOLD = 0.8
LAMBDA_PRESENCE = 1.0
LAMBDA_SPACING = 0.5
MIN_DISTANCE = 9
VISION_SIM_WEIGHT = 0.0     # reference: minamo_sim = 0*vision_sim + 1*topo_sim
TOPO_SIM_WEIGHT = 1.0


def get_not_allowed(classes, include_illegal=False):
    res = []
    for num in range(CLASS_NUM):
        if num not in classes:
            if num > ILLEGAL_MAX_NUM:
                if include_illegal:
                    res.append(num)
            else:
                res.append(num)
    return res


def _build_constants(B, C, H, W, weight):
    """Host-side constants. Everything is O(S) or smaller (no dense pool)."""
    S = H * W
    w0, w1, w2, w3 = weight
    n_border = 2 * H + 2 * W - 4
    n_inner = S - n_border

    border = np.zeros((H, W), np.float32)
    border[0, :] = 1.0
    border[-1, :] = 1.0
    border[:, 0] = 1.0
    border[:, -1] = 1.0
    inner = 1.0 - border

    # spatial coefficients for the quadratic class constraints with the loss
    # weight and the MSE 1/(B*n) normalisation folded in; rows 2..7 stay zero
    # so `coefq * masked**2` only picks up the outer/inner rows.
    coefq = np.zeros((8, S), np.float32)
    coefq[0, :] = (w1 / (B * n_border)) * border.reshape(S)
    coefq[1, :] = (w1 / (B * n_inner)) * inner.reshape(S)

    # channel-group masks [8, C] (rows 3..7 are zero padding):
    #   row 0: classes not allowed on the border
    #   row 1: classes not allowed in the interior
    #   row 2: entrance classes
    masks = np.zeros((8, C), np.float32)
    masks[0, get_not_allowed([1, 11], include_illegal=True)] = 1.0
    masks[1, get_not_allowed([0, 1, 2, 3, 4, 5, 6, 7, 8, 9, 10, 12],
                             include_illegal=True)] = 1.0
    masks[2, [10, 11]] = 1.0

    # selector of 4x4-block bottom-right corners: after the shifted-add
    # accumulation r[s] = sum_{dy,dx in [0,3]} diff[s - dy*W - dx], the valid
    # (non-wrapping) block sums live exactly at these positions.
    sel = np.zeros((H, W), np.float32)
    sel[GRID_SIZE - 1::GRID_SIZE, GRID_SIZE - 1::GRID_SIZE] = 1.0
    sel = sel.reshape(1, S)

    # entrance spacing term: the reference applies no nonlinearity to the
    # convolved density, so for a full conv (padding = K-1) with a normalised
    # kernel: mean(density) = sum(entrance) * sum(kernel) / (B*(H+K-1)*(W+K-1))
    # and (spacing_loss * center_weight).mean() = spacing_loss * mean(cw).
    yy, xx = np.meshgrid(np.arange(H), np.arange(W), indexing="ij")
    cw = 1.0 - np.sqrt(((xx - W // 2) / W * 2.0) ** 2 +
                       ((yy - H // 2) / H * 2.0) ** 2)
    cw_mean = float(np.clip(cw, 0.0, 1.0).mean())
    size = MIN_DISTANCE
    ky, kx = np.meshgrid(np.arange(size), np.arange(size), indexing="ij")
    center = size // 2
    dist = np.sqrt((kx - center) ** 2 + (ky - center) ** 2)
    k = 1.0 / (dist + 1.0)
    k = k / k.sum()
    ksum = float(k.sum())                       # == 1.0 after normalisation
    dens_denom = float(B * (H + size - 1) * (W + size - 1))
    c_spacing = w2 * LAMBDA_SPACING * cw_mean * ksum / dens_denom

    G = (H // GRID_SIZE) * (W // GRID_SIZE)
    return coefq, masks, sel, c_spacing, G


def _make_kernel(C, S, W, c_spacing):
    R = 2 * C   # first scalar-partials row in the output block

    def kernel(pred_ref, target_ref, masks_ref, coefq_ref, sel_ref, out_ref):
        # one batch element per grid step: refs are [C, S] (batch dim squeezed)
        pred_n = pred_ref[...]                 # native dtype (f32 or bf16)
        tgt_n = target_ref[...]

        # ---- channel-group sums: one 2-D MXU matmul, fed in native dtype ----
        masked = jnp.dot(masks_ref[...], pred_n,
                         preferred_element_type=jnp.float32)       # [8, S] f32
        ent_row = masked[2:3, :]                                   # [1, S]

        # class constraints (outer/inner MSE; weights + spatial masks folded
        # into coefq rows 0/1) + entrance-spacing term (linear in ent_row)
        fused = (jnp.sum(coefq_ref[...] * masked * masked)
                 + c_spacing * jnp.sum(ent_row))

        # entrance presence: max over pixels of the entrance prob-sum
        max_ent = jnp.max(ent_row)

        # elementwise / entropy path in f32 (required on v5e; on v6e/v7x the
        # sub/abs could stay bf16 to halve vreg pressure)
        pred = pred_n.astype(jnp.float32)
        tgt = tgt_n.astype(jnp.float32)

        # max over channels (feeds the dynamic zero margin), summed over pixels
        sum_max = jnp.sum(jnp.max(pred, axis=0, keepdims=True))

        # per-class counts (lane-axis reductions)
        pred_count = jnp.sum(pred, axis=1, keepdims=True)          # [C, 1]
        true_count = jnp.sum(tgt, axis=1, keepdims=True)           # [C, 1]

        # entropy integrand (EUP log); normalisation finishes in the epilogue
        ent_sum = jnp.sum(pred * jnp.log(pred + 1e-6))

        # ---- local 4x4 block-count L1: separable shifted-add pooling -------
        # replaces the dense [S, G] pool matmul; r[s] accumulates the 4x4
        # window ending at s, `sel` keeps only block corners (abs(0)=0 for the
        # masked-out lanes, wrap-around never reaches a selected lane).
        diff = pred - tgt
        r = diff + pltpu.roll(diff, 1, axis=1)
        r = r + pltpu.roll(r, 2, axis=1)
        r = r + pltpu.roll(r, W, axis=1)
        r = r + pltpu.roll(r, 2 * W, axis=1)
        local_sum = jnp.sum(sel_ref[...] * jnp.abs(r))

        # ---- per-batch partials (lane-dense [2C+8, 128] output block) -------
        out_ref[0:C, :] = jnp.broadcast_to(pred_count, (C, 128))
        out_ref[C:2 * C, :] = jnp.broadcast_to(true_count, (C, 128))
        out_ref[R + 0:R + 1, :] = jnp.full((1, 128), fused, jnp.float32)
        out_ref[R + 1:R + 2, :] = jnp.full((1, 128), max_ent, jnp.float32)
        out_ref[R + 2:R + 3, :] = jnp.full((1, 128), sum_max, jnp.float32)
        out_ref[R + 3:R + 4, :] = jnp.full((1, 128), ent_sum, jnp.float32)
        out_ref[R + 4:R + 5, :] = jnp.full((1, 128), local_sum, jnp.float32)
        out_ref[R + 5:R + 8, :] = jnp.zeros((3, 128), jnp.float32)

    return kernel


@functools.lru_cache(maxsize=None)
def _get_ginka_loss_fn(B, C, H, W, D, weight, input_dtype_name):
    """Build (and cache) the jitted pallas program + device constants."""
    assert C == CLASS_NUM, "channel masks are built for CLASS_NUM classes"
    assert H >= 3 and W >= 3, "map interior must be non-empty"
    assert H % GRID_SIZE == 0 and W % GRID_SIZE == 0, \
        "4x4 local pooling assumes H, W divisible by GRID_SIZE"

    S = H * W
    input_dtype = jnp.dtype(input_dtype_name)
    w0, w1, w2, w3 = weight
    map_area = math.sqrt(H * W)
    rows = 2 * C + 8

    coefq_np, masks_np, sel_np, c_spacing, G = _build_constants(B, C, H, W,
                                                                weight)
    kernel = _make_kernel(C, S, W, c_spacing)

    # shape-derived VMEM budget: pred+target double-buffered blocks + f32
    # temporaries + constants + output blocks, capped below v7x's 64 MiB.
    in_item = input_dtype.itemsize
    io_bytes = 2 * 2 * C * S * in_item          # pred+target, double buffered
    tmp_bytes = 12 * C * S * 4                  # f32 intermediates headroom
    const_bytes = 8 * C * in_item + 9 * S * 4
    out_bytes = 2 * rows * 128 * 4
    vmem_limit = io_bytes + tmp_bytes + const_bytes + out_bytes + (1 << 20)
    vmem_limit = int(min(max(vmem_limit, 4 << 20), 56 << 20))

    grid_spec = pltpu.PrefetchScalarGridSpec(
        num_scalar_prefetch=0,
        grid=(B,),
        in_specs=[
            pl.BlockSpec((None, C, S), lambda b: (b, 0, 0)),   # pred  [C, S]
            pl.BlockSpec((None, C, S), lambda b: (b, 0, 0)),   # target [C, S]
            pl.BlockSpec((8, C), lambda b: (0, 0)),            # channel masks
            pl.BlockSpec((8, S), lambda b: (0, 0)),            # spatial coeffs
            pl.BlockSpec((1, S), lambda b: (0, 0)),            # 4x4 selector
        ],
        out_specs=pl.BlockSpec((None, rows, 128), lambda b: (b, 0, 0)),
    )

    pallas_fn = pl.pallas_call(
        kernel,
        out_shape=jax.ShapeDtypeStruct((B, rows, 128), jnp.float32),
        grid_spec=grid_spec,
        compiler_params=pltpu.CompilerParams(
            dimension_semantics=("parallel",),   # split B across TCs on v7x
            vmem_limit_bytes=vmem_limit,
        ),
    )

    masks_dev = jnp.asarray(masks_np, dtype=input_dtype)
    coefq_dev = jnp.asarray(coefq_np)
    sel_dev = jnp.asarray(sel_np)

    def loss_fn(pred, target, target_topo_feat, w_topo):
        pred3 = jnp.reshape(pred, (B, C, S)).astype(input_dtype)
        tgt3 = jnp.reshape(target, (B, C, S)).astype(input_dtype)
        partials = pallas_fn(pred3, tgt3, masks_dev, coefq_dev, sel_dev)

        col = partials[:, :, 0]                       # [B, 2C+8]
        pc = col[:, 0:C]                              # per-class pred counts
        tc = col[:, C:2 * C]                          # per-class target counts
        fused_sum = jnp.sum(col[:, 2 * C + 0])        # class + spacing (weighted)
        max_ent_b = col[:, 2 * C + 1]                 # per-batch entrance max
        mean_max = jnp.sum(col[:, 2 * C + 2]) / (B * S)
        ent_sum = jnp.sum(col[:, 2 * C + 3])
        local_sum = jnp.sum(col[:, 2 * C + 4])

        # ---- entrance presence ----
        presence = jnp.mean(jnp.maximum(PRESENCE_THRESHOLD - max_ent_b, 0.0))

        # ---- adaptive count loss (the only cross-batch coupling, via the
        #      dynamic zero margin, runs here on tiny [B, C] arrays) ----
        dzm = ZERO_MARGIN_SCALE * mean_max * map_area
        zero_mask = tc == 0.0
        abs_err = jnp.abs(pc - tc)
        margin = jnp.where(zero_mask, dzm, MARGIN_RATIO * tc)
        safe_true = jnp.where(zero_mask, 1.0, tc)     # zero branch overwritten
        rel = abs_err / safe_true
        lpc = jnp.where(abs_err <= margin, rel * rel,
                        (rel - 0.5 * MARGIN_RATIO) ** 2)
        relu_e = jnp.maximum(abs_err - dzm, 0.0)
        lpc = jnp.where(zero_mask, relu_e * relu_e / map_area, lpc)
        count_terms = jnp.mean(lpc)

        entropy = -ent_sum / (B * S)
        count_terms = count_terms + LAMBDA_ENTROPY * entropy
        if LAMBDA_MAX != 0.0:                         # dead in the reference
            count_terms = count_terms + LAMBDA_MAX * (1.0 - mean_max)
        count_terms = count_terms + LAMBDA_LOCAL * local_sum / (B * C * G)

        # ---- minamo similarity (deterministic stand-in; vision branch has
        #      weight 0 in the reference and is dropped) ----
        feat = pc * (1.0 / S)
        topo_feat = jnp.dot(feat, w_topo.astype(jnp.float32))
        t = target_topo_feat.astype(jnp.float32)
        dotp = jnp.sum(topo_feat * t, axis=1)
        na = jnp.sqrt(jnp.sum(topo_feat * topo_feat, axis=1))
        nb = jnp.sqrt(jnp.sum(t * t, axis=1))
        topo_sim = dotp / (jnp.maximum(na, 1e-8) * jnp.maximum(nb, 1e-8))
        minamo_loss = jnp.mean(1.0 - TOPO_SIM_WEIGHT * topo_sim)

        return (fused_sum
                + w2 * LAMBDA_PRESENCE * presence
                + w3 * count_terms
                + w0 * minamo_loss)

    return jax.jit(loss_fn)


def ginka_loss(pred, target, target_vision_feat, target_topo_feat,
               w_vis, w_topo, weight=(0.5, 0.2, 0.1, 0.2),
               input_dtype=jnp.float32):
    """pred/target: NCHW [B, C, H, W] probability maps.

    target_vision_feat / w_vis are accepted for API parity but unused: the
    reference weighs the vision similarity by 0 (dead branch).  On v6e/v7x,
    input_dtype=jnp.bfloat16 halves the HBM->VMEM DMA and feeds the MXU in its
    native dtype (note: bf16 quantisation can flip near-margin count branches,
    so keep f32 for eval parity).
    """
    del target_vision_feat, w_vis
    B, C, H, W = pred.shape
    D = int(w_topo.shape[1])
    loss_fn = _get_ginka_loss_fn(int(B), int(C), int(H), int(W), D,
                                 tuple(float(x) for x in weight),
                                 jnp.dtype(input_dtype).name)
    return loss_fn(pred, target, target_topo_feat, w_topo)


if __name__ == "__main__":
    B, C, H, W, D = 2, 32, 16, 16, 16

    key = jax.random.PRNGKey(0)
    k1, k2, k3, k4, k5 = jax.random.split(key, 5)

    logits = jax.random.normal(k1, (B, C, H, W), jnp.float32)
    pred = jax.nn.softmax(logits, axis=1)                           # prob map
    tgt_idx = jax.random.randint(k2, (B, H, W), 0, C)
    target = jax.nn.one_hot(tgt_idx, C, axis=1, dtype=jnp.float32)  # [B,C,H,W]

    target_vision_feat = jax.random.normal(k3, (B, D), jnp.float32)
    target_topo_feat = jax.random.normal(k4, (B, D), jnp.float32)
    w_vis = jnp.zeros((C, D), jnp.float32)                          # unused
    w_topo = 0.1 * jax.random.normal(k5, (C, D), jnp.float32)

    loss = ginka_loss(pred, target, target_vision_feat, target_topo_feat,
                      w_vis, w_topo)
    jax.block_until_ready(loss)

    # second call reuses the cached jitted pallas program (no retrace/rebuild)
    loss2 = ginka_loss(pred, target, target_vision_feat, target_topo_feat,
                       w_vis, w_topo)
    jax.block_until_ready(loss2)
    assert bool(jnp.isfinite(loss)) and bool(jnp.isfinite(loss2))
    print("KERNEL_OK")
</pallas_src>

<mosaic_0001>
module attributes {stable_mosaic.version = 11 : i64} {
  func.func @kernel(%arg0: i32, %arg1: memref<1x32x256xf32, #tpu.memory_space<vmem>>, %arg2: memref<1x32x256xf32, #tpu.memory_space<vmem>>, %arg3: memref<8x32xf32, #tpu.memory_space<vmem>>, %arg4: memref<8x256xf32, #tpu.memory_space<vmem>>, %arg5: memref<1x256xf32, #tpu.memory_space<vmem>>, %arg6: memref<1x72x128xf32, #tpu.memory_space<vmem>>) attributes {dimension_semantics = [#tpu.dimension_semantics<parallel>], iteration_bounds = array<i64: 2>, scalar_prefetch = 0 : i64, scratch_operands = 0 : i64, tpu.core_type = #tpu.core_type<tc>, window_params = [{transform_indices = @transform_0, window_bounds = array<i64: 1, 32, 256>}, {transform_indices = @transform_1, window_bounds = array<i64: 1, 32, 256>}, {pipeline_mode = #tpu.pipeline_mode<synchronous>, transform_indices = @transform_2, window_bounds = array<i64: 8, 32>}, {pipeline_mode = #tpu.pipeline_mode<synchronous>, transform_indices = @transform_3, window_bounds = array<i64: 8, 256>}, {pipeline_mode = #tpu.pipeline_mode<synchronous>, transform_indices = @transform_4, window_bounds = array<i64: 1, 256>}, {transform_indices = @transform_5, window_bounds = array<i64: 1, 72, 128>}]} {
    %c0 = arith.constant 0 : index
    %c0_0 = arith.constant 0 : index
    %c0_1 = arith.constant 0 : index
    %0 = vector.load %arg1[%c0, %c0_0, %c0_1] : memref<1x32x256xf32, #tpu.memory_space<vmem>>, vector<1x32x256xf32>
    %1 = vector.shape_cast %0 : vector<1x32x256xf32> to vector<32x256xf32>
    %c0_2 = arith.constant 0 : index
    %c0_3 = arith.constant 0 : index
    %c0_4 = arith.constant 0 : index
    %2 = vector.load %arg2[%c0_2, %c0_3, %c0_4] : memref<1x32x256xf32, #tpu.memory_space<vmem>>, vector<1x32x256xf32>
    %3 = vector.shape_cast %2 : vector<1x32x256xf32> to vector<32x256xf32>
    %c0_5 = arith.constant 0 : index
    %c0_6 = arith.constant 0 : index
    %4 = vector.load %arg3[%c0_5, %c0_6] : memref<8x32xf32, #tpu.memory_space<vmem>>, vector<8x32xf32>
    %cst = arith.constant dense<0.000000e+00> : vector<8x256xf32>
    %5 = tpu.matmul %4, %1, %cst {dimension_numbers = #tpu.dot_dimension_numbers<[1], [0], [0], [1], [0, 0, 1, 1], [], []>} : vector<8x32xf32>, vector<32x256xf32>, vector<8x256xf32> -> vector<8x256xf32>
    %6 = vector.extract_strided_slice %5 {offsets = [2, 0], sizes = [1, 256], strides = [1, 1]} : vector<8x256xf32> to vector<1x256xf32>
    %c0_7 = arith.constant 0 : index
    %c0_8 = arith.constant 0 : index
    %7 = vector.load %arg4[%c0_7, %c0_8] : memref<8x256xf32, #tpu.memory_space<vmem>>, vector<8x256xf32>
    %8 = arith.mulf %7, %5 : vector<8x256xf32>
    %9 = arith.mulf %8, %5 : vector<8x256xf32>
    %10 = vector.shape_cast %9 : vector<8x256xf32> to vector<1x8x256xf32>
    %cst_9 = arith.constant dense<0.000000e+00> : vector<1xf32>
    %11 = vector.multi_reduction <add>, %10, %cst_9 [1, 2] : vector<1x8x256xf32> to vector<1xf32>
    %12 = vector.shape_cast %11 : vector<1xf32> to vector<1x1x1xf32>
    %13 = vector.extract %12[0, 0, 0] : f32 from vector<1x1x1xf32>
    %14 = vector.shape_cast %6 : vector<1x256xf32> to vector<1x1x256xf32>
    %cst_10 = arith.constant dense<0.000000e+00> : vector<1xf32>
    %15 = vector.multi_reduction <add>, %14, %cst_10 [1, 2] : vector<1x1x256xf32> to vector<1xf32>
    %16 = vector.shape_cast %15 : vector<1xf32> to vector<1x1x1xf32>
    %17 = vector.extract %16[0, 0, 0] : f32 from vector<1x1x1xf32>
    %cst_11 = arith.constant 1.1354603E-5 : f32
    %18 = arith.mulf %cst_11, %17 : f32
    %19 = arith.addf %13, %18 : f32
    %20 = vector.shape_cast %6 : vector<1x256xf32> to vector<1x1x256xf32>
    %cst_12 = arith.constant dense<0xFF800000> : vector<1xf32>
    %21 = vector.multi_reduction <maximumf>, %20, %cst_12 [1, 2] : vector<1x1x256xf32> to vector<1xf32>
    %22 = vector.shape_cast %21 : vector<1xf32> to vector<1x1x1xf32>
    %23 = vector.extract %22[0, 0, 0] : f32 from vector<1x1x1xf32>
    %cst_13 = arith.constant dense<0xFF800000> : vector<256xf32>
    %24 = vector.multi_reduction <maximumf>, %1, %cst_13 [0] : vector<32x256xf32> to vector<256xf32>
    %25 = vector.shape_cast %24 : vector<256xf32> to vector<1x256xf32>
    %26 = vector.shape_cast %25 : vector<1x256xf32> to vector<1x1x256xf32>
    %cst_14 = arith.constant dense<0.000000e+00> : vector<1xf32>
    %27 = vector.multi_reduction <add>, %26, %cst_14 [1, 2] : vector<1x1x256xf32> to vector<1xf32>
    %28 = vector.shape_cast %27 : vector<1xf32> to vector<1x1x1xf32>
    %29 = vector.extract %28[0, 0, 0] : f32 from vector<1x1x1xf32>
    %cst_15 = arith.constant dense<0.000000e+00> : vector<32xf32>
    %30 = vector.multi_reduction <add>, %1, %cst_15 [1] : vector<32x256xf32> to vector<32xf32>
    %31 = vector.shape_cast %30 : vector<32xf32> to vector<32x1xf32>
    %cst_16 = arith.constant dense<0.000000e+00> : vector<32xf32>
    %32 = vector.multi_reduction <add>, %3, %cst_16 [1] : vector<32x256xf32> to vector<32xf32>
    %33 = vector.shape_cast %32 : vector<32xf32> to vector<32x1xf32>
    %cst_17 = arith.constant 9.99999997E-7 : f32
    %34 = vector.broadcast %cst_17 : f32 to vector<32x256xf32>
    %35 = arith.addf %1, %34 : vector<32x256xf32>
    %36 = math.log %35 : vector<32x256xf32>
    %37 = arith.mulf %1, %36 : vector<32x256xf32>
    %38 = vector.shape_cast %37 : vector<32x256xf32> to vector<1x32x256xf32>
    %cst_18 = arith.constant dense<0.000000e+00> : vector<1xf32>
    %39 = vector.multi_reduction <add>, %38, %cst_18 [1, 2] : vector<1x32x256xf32> to vector<1xf32>
    %40 = vector.shape_cast %39 : vector<1xf32> to vector<1x1x1xf32>
    %41 = vector.extract %40[0, 0, 0] : f32 from vector<1x1x1xf32>
    %42 = arith.subf %1, %3 : vector<32x256xf32>
    %c1_i32 = arith.constant 1 : i32
    %43 = tpu.dynamic_rotate %42 by %c1_i32 dim 1 : vector<32x256xf32>, i32 -> vector<32x256xf32>
    %44 = arith.addf %42, %43 : vector<32x256xf32>
    %c2_i32 = arith.constant 2 : i32
    %45 = tpu.dynamic_rotate %44 by %c2_i32 dim 1 : vector<32x256xf32>, i32 -> vector<32x256xf32>
    %46 = arith.addf %44, %45 : vector<32x256xf32>
    %c16_i32 = arith.constant 16 : i32
    %47 = tpu.dynamic_rotate %46 by %c16_i32 dim 1 : vector<32x256xf32>, i32 -> vector<32x256xf32>
    %48 = arith.addf %46, %47 : vector<32x256xf32>
    %c32_i32 = arith.constant 32 : i32
    %49 = tpu.dynamic_rotate %48 by %c32_i32 dim 1 : vector<32x256xf32>, i32 -> vector<32x256xf32>
    %50 = arith.addf %48, %49 : vector<32x256xf32>
    %c0_19 = arith.constant 0 : index
    %c0_20 = arith.constant 0 : index
    %51 = vector.load %arg5[%c0_19, %c0_20] : memref<1x256xf32, #tpu.memory_space<vmem>>, vector<1x256xf32>
    %52 = math.absf %50 : vector<32x256xf32>
    %53 = vector.broadcast %51 : vector<1x256xf32> to vector<32x256xf32>
    %54 = arith.mulf %53, %52 : vector<32x256xf32>
    %55 = vector.shape_cast %54 : vector<32x256xf32> to vector<1x32x256xf32>
    %cst_21 = arith.constant dense<0.000000e+00> : vector<1xf32>
    %56 = vector.multi_reduction <add>, %55, %cst_21 [1, 2] : vector<1x32x256xf32> to vector<1xf32>
    %57 = vector.shape_cast %56 : vector<1xf32> to vector<1x1x1xf32>
    %58 = vector.extract %57[0, 0, 0] : f32 from vector<1x1x1xf32>
    %59 = vector.shape_cast %31 : vector<32x1xf32> to vector<32x1xf32>
    %60 = vector.broadcast %59 : vector<32x1xf32> to vector<32x128xf32>
    %c0_22 = arith.constant 0 : index
    %c0_23 = arith.constant 0 : index
    %c0_24 = arith.constant 0 : index
    %61 = vector.load %arg6[%c0_22, %c0_23, %c0_24] : memref<1x72x128xf32, #tpu.memory_space<vmem>>, vector<1x32x128xf32>
    %62 = vector.shape_cast %61 : vector<1x32x128xf32> to vector<32x128xf32>
    %63 = vector.shape_cast %60 : vector<32x128xf32> to vector<1x32x128xf32>
    tpu.vector_store %arg6[%c0_22, %c0_23, %c0_24], %63 {strides = array<i32>} : memref<1x72x128xf32, #tpu.memory_space<vmem>>, vector<1x32x128xf32>,
    %64 = vector.shape_cast %33 : vector<32x1xf32> to vector<32x1xf32>
    %65 = vector.broadcast %64 : vector<32x1xf32> to vector<32x128xf32>
    %c0_25 = arith.constant 0 : index
    %c32 = arith.constant 32 : index
    %c0_26 = arith.constant 0 : index
    %66 = vector.load %arg6[%c0_25, %c32, %c0_26] : memref<1x72x128xf32, #tpu.memory_space<vmem>>, vector<1x32x128xf32>
    %67 = vector.shape_cast %66 : vector<1x32x128xf32> to vector<32x128xf32>
    %68 = vector.shape_cast %65 : vector<32x128xf32> to vector<1x32x128xf32>
    tpu.vector_store %arg6[%c0_25, %c32, %c0_26], %68 {strides = array<i32>} : memref<1x72x128xf32, #tpu.memory_space<vmem>>, vector<1x32x128xf32>,
    %69 = vector.broadcast %19 : f32 to vector<1x128xf32>
    %c0_27 = arith.constant 0 : index
    %c64 = arith.constant 64 : index
    %c0_28 = arith.constant 0 : index
    %70 = vector.load %arg6[%c0_27, %c64, %c0_28] : memref<1x72x128xf32, #tpu.memory_space<vmem>>, vector<1x1x128xf32>
    %71 = vector.shape_cast %70 : vector<1x1x128xf32> to vector<1x128xf32>
    %72 = vector.shape_cast %69 : vector<1x128xf32> to vector<1x1x128xf32>
    tpu.vector_store %arg6[%c0_27, %c64, %c0_28], %72 {strides = array<i32>} : memref<1x72x128xf32, #tpu.memory_space<vmem>>, vector<1x1x128xf32>,
    %73 = vector.broadcast %23 : f32 to vector<1x128xf32>
    %c0_29 = arith.constant 0 : index
    %c65 = arith.constant 65 : index
    %c0_30 = arith.constant 0 : index
    %74 = vector.load %arg6[%c0_29, %c65, %c0_30] : memref<1x72x128xf32, #tpu.memory_space<vmem>>, vector<1x1x128xf32>
    %75 = vector.shape_cast %74 : vector<1x1x128xf32> to vector<1x128xf32>
    %76 = vector.shape_cast %73 : vector<1x128xf32> to vector<1x1x128xf32>
    tpu.vector_store %arg6[%c0_29, %c65, %c0_30], %76 {strides = array<i32>} : memref<1x72x128xf32, #tpu.memory_space<vmem>>, vector<1x1x128xf32>,
    %77 = vector.broadcast %29 : f32 to vector<1x128xf32>
    %c0_31 = arith.constant 0 : index
    %c66 = arith.constant 66 : index
    %c0_32 = arith.constant 0 : index
    %78 = vector.load %arg6[%c0_31, %c66, %c0_32] : memref<1x72x128xf32, #tpu.memory_space<vmem>>, vector<1x1x128xf32>
    %79 = vector.shape_cast %78 : vector<1x1x128xf32> to vector<1x128xf32>
    %80 = vector.shape_cast %77 : vector<1x128xf32> to vector<1x1x128xf32>
    tpu.vector_store %arg6[%c0_31, %c66, %c0_32], %80 {strides = array<i32>} : memref<1x72x128xf32, #tpu.memory_space<vmem>>, vector<1x1x128xf32>,
    %81 = vector.broadcast %41 : f32 to vector<1x128xf32>
    %c0_33 = arith.constant 0 : index
    %c67 = arith.constant 67 : index
    %c0_34 = arith.constant 0 : index
    %82 = vector.load %arg6[%c0_33, %c67, %c0_34] : memref<1x72x128xf32, #tpu.memory_space<vmem>>, vector<1x1x128xf32>
    %83 = vector.shape_cast %82 : vector<1x1x128xf32> to vector<1x128xf32>
    %84 = vector.shape_cast %81 : vector<1x128xf32> to vector<1x1x128xf32>
    tpu.vector_store %arg6[%c0_33, %c67, %c0_34], %84 {strides = array<i32>} : memref<1x72x128xf32, #tpu.memory_space<vmem>>, vector<1x1x128xf32>,
    %85 = vector.broadcast %58 : f32 to vector<1x128xf32>
    %c0_35 = arith.constant 0 : index
    %c68 = arith.constant 68 : index
    %c0_36 = arith.constant 0 : index
    %86 = vector.load %arg6[%c0_35, %c68, %c0_36] : memref<1x72x128xf32, #tpu.memory_space<vmem>>, vector<1x1x128xf32>
    %87 = vector.shape_cast %86 : vector<1x1x128xf32> to vector<1x128xf32>
    %88 = vector.shape_cast %85 : vector<1x128xf32> to vector<1x1x128xf32>
    tpu.vector_store %arg6[%c0_35, %c68, %c0_36], %88 {strides = array<i32>} : memref<1x72x128xf32, #tpu.memory_space<vmem>>, vector<1x1x128xf32>,
    %cst_37 = arith.constant 0.000000e+00 : f32
    %89 = vector.broadcast %cst_37 : f32 to vector<3x128xf32>
    %c0_38 = arith.constant 0 : index
    %c69 = arith.constant 69 : index
    %c0_39 = arith.constant 0 : index
    %90 = vector.load %arg6[%c0_38, %c69, %c0_39] : memref<1x72x128xf32, #tpu.memory_space<vmem>>, vector<1x3x128xf32>
    %91 = vector.shape_cast %90 : vector<1x3x128xf32> to vector<3x128xf32>
    %92 = vector.shape_cast %89 : vector<3x128xf32> to vector<1x3x128xf32>
    tpu.vector_store %arg6[%c0_38, %c69, %c0_39], %92 {strides = array<i32>} : memref<1x72x128xf32, #tpu.memory_space<vmem>>, vector<1x3x128xf32>,
    return
  }
  func.func @transform_0(%arg0: i32) -> (i32, i32, i32) {
    %c0_i32 = arith.constant 0 : i32
    %c0_i32_0 = arith.constant 0 : i32
    %c0_i32_1 = arith.constant 0 : i32
    return %arg0, %c0_i32, %c0_i32_0 : i32, i32, i32
  }
  func.func @transform_1(%arg0: i32) -> (i32, i32, i32) {
    %c0_i32 = arith.constant 0 : i32
    %c0_i32_0 = arith.constant 0 : i32
    %c0_i32_1 = arith.constant 0 : i32
    return %arg0, %c0_i32, %c0_i32_0 : i32, i32, i32
  }
  func.func @transform_2(%arg0: i32) -> (i32, i32) {
    %c0_i32 = arith.constant 0 : i32
    %c0_i32_0 = arith.constant 0 : i32
    %c0_i32_1 = arith.constant 0 : i32
    return %c0_i32, %c0_i32_0 : i32, i32
  }
  func.func @transform_3(%arg0: i32) -> (i32, i32) {
    %c0_i32 = arith.constant 0 : i32
    %c0_i32_0 = arith.constant 0 : i32
    %c0_i32_1 = arith.constant 0 : i32
    return %c0_i32, %c0_i32_0 : i32, i32
  }
  func.func @transform_4(%arg0: i32) -> (i32, i32) {
    %c0_i32 = arith.constant 0 : i32
    %c0_i32_0 = arith.constant 0 : i32
    %c0_i32_1 = arith.constant 0 : i32
    return %c0_i32, %c0_i32_0 : i32, i32
  }
  func.func @transform_5(%arg0: i32) -> (i32, i32, i32) {
    %c0_i32 = arith.constant 0 : i32
    %c0_i32_0 = arith.constant 0 : i32
    %c0_i32_1 = arith.constant 0 : i32
    return %arg0, %c0_i32, %c0_i32_0 : i32, i32, i32
  }
}

</mosaic_0001>

<bundles_post_ra>
// kernel: loss_fn.1
= control target key start
LH: loop header
LB: loop body
LE: loop exit
PB: predicated region body
PF: predicated region fallthrough
CT: control target
= control target key end

     0   :  { %s861_s18 = smov 0   ;;  %s1135_s0 = inlined_call_operand.vmem [shape: f32[2,32,256], index: 0, kind: input, shape index: {}]   ;;  %s1136_s1 = inlined_call_operand.vmem [shape: f32[2,32,256], index: 1, kind: input, shape index: {}]   ;;  %s1137_s2 = inlined_call_operand.vmem [shape: f32[8,32], index: 2, kind: input, shape index: {}]   ;;  %s1138_s3 = inlined_call_operand.vmem [shape: f32[8,256], index: 3, kind: input, shape index: {}]   ;;  %s1139_s4 = inlined_call_operand.vmem [shape: f32[1,256], index: 4, kind: input, shape index: {}]   ;;  %s1140_s5 = inlined_call_operand.vmem [shape: f32[2,72,128], index: 5, kind: output, shape index: {}]  }
   0x1 LB: > { %s761_s19 = sadd.s32 4294967295, %s824_s18   ;;  %p765_p0 = scmp.ge.s32.totalorder %s824_s18, 1  ;;  %s824_s18 = sphi %s861_s18, %s15_s18  }
   0x2   : > { %p197_p1 = scmp.lt.s32.totalorder %s824_s18, 3 }
   0x4   : > { %p198_p2 = pnand %p765_p0, %p197_p1 }
   0x5   : > { %p230_p3 = scmp.lt.s32.totalorder (!%p198_p2), %s761_s19, 1  ;;  %s826_s27 = smov (!%p198_p2), 1  }
   0x6   : > { %201 = sbr.rel (%p198_p2) target bundleno = 716 (0x2cc), region = 40  ;;  %s827_s29 = smov (!%p198_p2), 2  }
   0x7   : > { %s829_s10 = smov (!%p198_p2), 16   ;;  %s830_s11 = smov (!%p198_p2), 32  }
   0xb   : > { %s1142_s19 = smov (!%p230_p3, %s761_s19), 1  ;;  %v513_v24 = vlaneseq  ;;  %v261_v42 = vld [vmem:[%s1137_s2] sm:$0xff]  ;;  %vm262_vm1 = vcmask 261120   ;;  %v828_v44 = vmov 0.0   ;;  %vm359_vm4 = vcmask 1040384  }
   0xc   : > { %s774_s20 = sshll.u32 %s1142_s19, 6  ;;  %s776_s28 = smul.u32 72, %s1142_s19  ;;  %330 = vmatprep.mubr.f32.mxu0 %v828_v44  ;;  %vm374_vm5 = vcmask 1042434  }
   0xd   : > { %s234_s23 = scalar_lea.vmem %s1135_s0, %s774_s20  ;;  %s878_s26 = scalar_lea.vmem %s1136_s1, %s774_s20  ;;  %v945_v25 = vand.u32 127, %v513_v24 }
   0xe   : > { %v880_v0 = vld [vmem:[%s234_s23 + $0x10] sm:$0xff]  ;;  %v885_v2 = vld [vmem:[%s234_s23] sm:$0xff]  ;;  %v892_v5 = vld [vmem:[%s234_s23 + $0x18] sm:$0xff]  ;;  %s964_s7 = scalar_lea.vmem %s1140_s5, %s776_s28 }
   0xf   : > { %v883_v1 = vld [vmem:[%s878_s26 + $0x10] sm:$0xff]  ;;  %v890_v4 = vld [vmem:[%s878_s26] sm:$0xff]  ;;  %v895_v6 = vld [vmem:[%s878_s26 + $0x18] sm:$0xff]  ;;  %vm515_vm0 = vcmp.lt.s32.totalorder %v945_v25, 1  ;;  %693 = vst [vmem:[%s964_s7 + $0x45] sm:$0x7] %v828_v44 }
  0x10   : > { %v491_v3 = vsub.f32 %v880_v0, %v883_v1  ;;  %v489_v7 = vsub.f32 %v885_v2, %v890_v4  ;;  %v899_v8 = vld [vmem:[%s234_s23 + $0x8] sm:$0xff]  ;;  %v492_v10 = vsub.f32 %v892_v5, %v895_v6  ;;  %v913_v14 = vld [vmem:[%s234_s23 + $0x38] sm:$0xff]  ;;  %v915_v15 = vld [vmem:[%s234_s23 + $0x20] sm:$0xff]  ;;  %vm548_vm2 = vcmp.lt.s32.totalorder %v945_v25, 2 }
  0x11   : > { %v902_v9 = vld [vmem:[%s878_s26 + $0x8] sm:$0xff]  ;;  %v918_v16 = vld [vmem:[%s878_s26 + $0x20] sm:$0xff]  ;;  %v920_v17 = vld [vmem:[%s234_s23 + $0x30] sm:$0xff]  ;;  %290 = vmatprep.subr.mxu0 %v913_v14  ;;  %vm581_vm3 = vcmp.lt.s32.totalorder %v945_v25, 16  ;;  %vm614_vm6 = vcmp.lt.s32.totalorder %v945_v25, 32  ;;  %v420_v25 = vadd.f32 %v892_v5, %v880_v0 }
  0x12   : > { %499 = vrot.lane.b32.xlu1 %v491_v3, %s826_s27  ;;  %497 = vrot.lane.b32.xlu0 %v489_v7, %s826_s27  ;;  %v490_v11 = vsub.f32 %v899_v8, %v902_v9  ;;  %v908_v12 = vld [vmem:[%s234_s23 + $0x28] sm:$0xff]  ;;  %v493_v19 = vsub.f32 %v915_v15, %v918_v16  ;;  %v930_v20 = vld [vmem:[%s878_s26 + $0x38] sm:$0xff] }
  0x13   : > { %v911_v13 = vld [vmem:[%s878_s26 + $0x28] sm:$0xff]  ;;  %291 = vmatpush1.msra.mxu0 %v920_v17  ;;  %v934_v21 = vld [vmem:[%s878_s26 + $0x30] sm:$0xff]  ;;  %v496_v22 = vsub.f32 %v913_v14, %v930_v20 }
  0x14   : > { %v494_v18 = vsub.f32 %v908_v12, %v911_v13  ;;  %292 = vmatprep.subr.mxu0 %v908_v12  ;;  %v495_v23 = vsub.f32 %v920_v17, %v934_v21 }
  0x15   : > { %293 = vmatpush1.msra.mxu0 %v915_v15 }
  0x16   : > { %507 = vrot.lane.b32.xlu1 %v492_v10, %s826_s27  ;;  %505 = vrot.lane.b32.xlu0 %v490_v11, %s826_s27 }
  0x17   : > { %294 = vmatprep.subr.mxu0 %v892_v5 }
  0x18   : > { %295 = vmatpush1.msra.mxu0 %v880_v0 }
  0x19   : > { %296 = vmatprep.subr.mxu0 %v899_v8 }
  0x1a   : > { %509 = vrot.lane.b32.xlu1 %v494_v18, %s826_s27  ;;  %501 = vrot.lane.b32.xlu0 %v493_v19, %s826_s27 }
  0x1b   : > { %297 = vmatpush1.msra.mxu0 %v885_v2 }
  0x1c   : > { %771 = vmatmul.mubr.msk.f32.vlgmr.msra.gmra.mxu0 %vm262_vm1, %v261_v42 }
  0x1e   : > { %511 = vrot.lane.b32.xlu1 %v496_v22, %s826_s27  ;;  %503 = vrot.lane.b32.xlu0 %v495_v23, %s826_s27 }
  0x84   : > { %v500_v26 = vpop.permute.xlu1 %499  ;;  %v498_v27 = vpop.permute.xlu0 %497 }
  0x88   : > { %v508_v28 = vpop.permute.xlu1 %507  ;;  %v506_v29 = vpop.permute.xlu0 %505 }
  0x89   : > { %v516_v30 = vsel %vm515_vm0, %v498_v27, %v506_v29  ;;  %v520_v31 = vsel %vm515_vm0, %v506_v29, %v498_v27  ;;  %v517_v34 = vsel %vm515_vm0, %v500_v26, %v508_v28  ;;  %v521_v35 = vsel %vm515_vm0, %v508_v28, %v500_v26 }
  0x8a   : > { %v524_v32 = vadd.f32 %v520_v31, %v489_v7  ;;  %v525_v33 = vadd.f32 %v516_v30, %v490_v11  ;;  %v526_v40 = vadd.f32 %v521_v35, %v491_v3  ;;  %v527_v41 = vadd.f32 %v517_v34, %v492_v10 }
  0x8b   : > { %v441_v30 = vadd.f32 1e-06, %v885_v2 }
  0x8c   : > { %v510_v36 = vpop.permute.xlu1 %509  ;;  %532 = vrot.lane.b32.xlu0 %v524_v32, %s827_s29  ;;  %540 = vrot.lane.b32.xlu1 %v525_v33, %s827_s29  ;;  %v502_v37 = vpop.permute.xlu0 %501 }
  0x8d   : > { %v518_v38 = vsel %vm515_vm0, %v502_v37, %v510_v36  ;;  %v522_v39 = vsel %vm515_vm0, %v510_v36, %v502_v37  ;;  %802 = vlog2.f32 %v441_v30 }
  0x8e   : > { %v528_v45 = vadd.f32 %v522_v39, %v493_v19  ;;  %v529_v46 = vadd.f32 %v518_v38, %v494_v18 }
  0x90   : > { %v512_v43 = vpop.permute.xlu1 %511  ;;  %534 = vrot.lane.b32.xlu0 %v526_v40, %s827_s29  ;;  %542 = vrot.lane.b32.xlu1 %v527_v41, %s827_s29  ;;  %v504_v47 = vpop.permute.xlu0 %503 }
  0x91   : > { %v519_v48 = vsel %vm515_vm0, %v504_v47, %v512_v43  ;;  %v523_v49 = vsel %vm515_vm0, %v512_v43, %v504_v47  ;;  %v444_v47 = vadd.f32 1e-06, %v892_v5 }
  0x92   : > { %v530_v50 = vadd.f32 %v523_v49, %v495_v23  ;;  %v531_v51 = vadd.f32 %v519_v48, %v496_v22 }
  0x94   : > { %536 = vrot.lane.b32.xlu0 %v528_v45, %s827_s29  ;;  %544 = vrot.lane.b32.xlu1 %v529_v46, %s827_s29 }
  0x98   : > { %538 = vrot.lane.b32.xlu0 %v530_v50, %s827_s29  ;;  %546 = vrot.lane.b32.xlu1 %v531_v51, %s827_s29 }
  0xfe   : > { %v541_v52 = vpop.permute.xlu1 %540  ;;  %v533_v53 = vpop.permute.xlu0 %532 }
  0xff   : > { %v549_v54 = vsel %vm548_vm2, %v533_v53, %v541_v52  ;;  %v553_v55 = vsel %vm548_vm2, %v541_v52, %v533_v53 }
 0x100   : > { %v557_v56 = vadd.f32 %v553_v55, %v524_v32  ;;  %v558_v57 = vadd.f32 %v549_v54, %v525_v33  ;;  %v442_v33 = vadd.f32 1e-06, %v899_v8  ;;  %v445_v54 = vadd.f32 1e-06, %v915_v15 }
 0x102   : > { %v543_v58 = vpop.permute.xlu1 %542  ;;  %565 = vrot.lane.b32.xlu0 %v557_v56, %s829_s10  ;;  %573 = vrot.lane.b32.xlu1 %v558_v57, %s829_s10  ;;  %v535_v59 = vpop.permute.xlu0 %534  ;;  %804 = vlog2.f32 %v442_v33 }
 0x103   : > { %v550_v60 = vsel %vm548_vm2, %v535_v59, %v543_v58  ;;  %v554_v61 = vsel %vm548_vm2, %v543_v58, %v535_v59  ;;  %v387_v59 = vmax.f32 %v885_v2, %v915_v15  ;;  %v332_v33 = vpop.f32.mrf.mxu0 }
 0x104   : > { %v559_v62 = vadd.f32 %v554_v61, %v526_v40  ;;  %v560_v63 = vadd.f32 %v550_v60, %v527_v41  ;;  %v443_v40 = vadd.f32 1e-06, %v880_v0  ;;  %v388_v60 = vmax.f32 %v880_v0, %v920_v17  ;;  %v803_v61 = vpop.eup %802 }
 0x106   : > { %v545_v3 = vpop.permute.xlu1 %544  ;;  %567 = vrot.lane.b32.xlu0 %v559_v62, %s829_s10  ;;  %575 = vrot.lane.b32.xlu1 %v560_v63, %s829_s10  ;;  %v537_v7 = vpop.permute.xlu0 %536  ;;  %806 = vlog2.f32 %v443_v40 }
 0x107   : > { %v551_v10 = vsel %vm548_vm2, %v537_v7, %v545_v3  ;;  %v555_v11 = vsel %vm548_vm2, %v545_v3, %v537_v7  ;;  %808 = vlog2.f32 %v444_v47  ;;  %v446_v3 = vadd.f32 1e-06, %v908_v12 }
 0x108   : > { %v561_v18 = vadd.f32 %v555_v11, %v528_v45  ;;  %v562_v19 = vadd.f32 %v551_v10, %v529_v46  ;;  %810 = vlog2.f32 %v445_v54  ;;  %v389_v10 = vmax.f32 %v387_v59, %v388_v60 }
 0x109   : > { %v447_v11 = vadd.f32 1e-06, %v920_v17  ;;  %812 = vlog2.f32 %v446_v3 }
 0x10a   : > { %v547_v22 = vpop.permute.xlu1 %546  ;;  %569 = vrot.lane.b32.xlu0 %v561_v18, %s829_s10  ;;  %577 = vrot.lane.b32.xlu1 %v562_v19, %s829_s10  ;;  %v539_v23 = vpop.permute.xlu0 %538 }
 0x10b   : > { %v552_v26 = vsel %vm548_vm2, %v539_v23, %v547_v22  ;;  %v556_v27 = vsel %vm548_vm2, %v547_v22, %v539_v23  ;;  %814 = vlog2.f32 %v447_v11  ;;  %v355_v11 = vrot.slane %v332_v33, 2 }
 0x10c   : > { %v563_v28 = vadd.f32 %v556_v27, %v530_v50  ;;  %v564_v29 = vadd.f32 %v552_v26, %v531_v51  ;;  %v390_v26 = vrot.slane %v389_v10, 4  ;;  %v448_v27 = vadd.f32 1e-06, %v913_v14 }
 0x10e   : > { %571 = vrot.lane.b32.xlu0 %v563_v28, %s829_s10  ;;  %579 = vrot.lane.b32.xlu1 %v564_v29, %s829_s10  ;;  %816 = vlog2.f32 %v448_v27 }
 0x10f   : > { %v805_v7 = vpop.eup %804 }
 0x110   : > { %v452_v22 = vmul.f32 0.6931472, %v805_v7 }
 0x113   : > { %v807_v23 = vpop.eup %806 }
 0x174   : > { %v574_v31 = vpop.permute.xlu1 %573  ;;  %v566_v32 = vpop.permute.xlu0 %565 }
 0x175   : > { %v582_v34 = vsel %vm581_vm3, %v566_v32, %v574_v31  ;;  %v586_v35 = vsel %vm581_vm3, %v574_v31, %v566_v32  ;;  %v466_v31 = vmul.f32 %v452_v22, %v899_v8  ;;  %v809_v32 = vpop.eup %808 }
 0x176   : > { %v998_v36 = vadd.f32 %v586_v35, %v557_v56  ;;  %v1000_v37 = vadd.f32 %v582_v34, %v558_v57  ;;  %v391_v34 = vmax.f32 %v389_v10, %v390_v26 }
 0x178   : > { %v576_v38 = vpop.permute.xlu1 %575  ;;  %598 = vrot.lane.b32.xlu0 %v998_v36, %s830_s11  ;;  %606 = vrot.lane.b32.xlu1 %v1000_v37, %s830_s11  ;;  %v568_v39 = vpop.permute.xlu0 %567  ;;  %v392_v47 = vrot.slane %v391_v34, 2 }
 0x179   : > { %v583_v41 = vsel %vm581_vm3, %v568_v39, %v576_v38  ;;  %v587_v42 = vsel %vm581_vm3, %v576_v38, %v568_v39  ;;  %v456_v38 = vmul.f32 0.6931472, %v809_v32  ;;  %v375_v32 = vsel %vm374_vm5, %v332_v33, -inf }
 0x17a   : > { %v1011_v43 = vadd.f32 %v587_v42, %v559_v62  ;;  %v1013_v44 = vadd.f32 %v583_v41, %v560_v63  ;;  %v396_v62 = vmax.f32 %v899_v8, %v908_v12  ;;  %v397_v63 = vmax.f32 %v892_v5, %v913_v14  ;;  %v811_v41 = vpop.eup %810  ;;  %v334_v42 = vpop.f32.mrf.mxu0 }
 0x17b   : > { %v813_v54 = vpop.eup %812  ;;  %v393_v59 = vmax.f32 %v391_v34, %v392_v47  ;;  %v376_v34 = vsel %vm374_vm5, %v334_v42, -inf }
 0x17c   : > { %v578_v45 = vpop.permute.xlu1 %577  ;;  %600 = vrot.lane.b32.xlu0 %v1011_v43, %s830_s11  ;;  %608 = vrot.lane.b32.xlu1 %v1013_v44, %s830_s11  ;;  %v570_v46 = vpop.permute.xlu0 %569 }
 0x17d   : > { %v584_v48 = vsel %vm581_vm3, %v570_v46, %v578_v45  ;;  %v588_v49 = vsel %vm581_vm3, %v578_v45, %v570_v46  ;;  %v338_v45 = vld [vmem:[%s1138_s3 + $0x8] sm:$0xff]  ;;  %v337_v46 = vld [vmem:[%s1138_s3] sm:$0xff]  ;;  %v815_v60 = vpop.eup %814 }
 0x17e   : > { %v1024_v50 = vadd.f32 %v588_v49, %v561_v18  ;;  %v1026_v51 = vadd.f32 %v584_v48, %v562_v19  ;;  %v398_v18 = vmax.f32 %v396_v62, %v397_v63  ;;  %v450_v19 = vmul.f32 0.6931472, %v803_v61  ;;  %v817_v22 = vpop.eup %816 }
 0x17f   : > { %v458_v49 = vmul.f32 0.6931472, %v811_v41  ;;  %v460_v62 = vmul.f32 0.6931472, %v813_v54  ;;  %v462_v26 = vmul.f32 0.6931472, %v815_v60  ;;  %v423_v54 = vadd.f32 %v908_v12, %v915_v15 }
 0x180   : > { %v580_v52 = vpop.permute.xlu1 %579  ;;  %602 = vrot.lane.b32.xlu0 %v1024_v50, %s830_s11  ;;  %610 = vrot.lane.b32.xlu1 %v1026_v51, %s830_s11  ;;  %v572_v53 = vpop.permute.xlu0 %571  ;;  %v465_v30 = vmul.f32 %v450_v19, %v885_v2  ;;  %v394_v19 = vrot.slane %v393_v59, 1 }
 0x181   : > { %v585_v55 = vsel %vm581_vm3, %v572_v53, %v580_v52  ;;  %v589_v56 = vsel %vm581_vm3, %v580_v52, %v572_v53  ;;  %v468_v52 = vmul.f32 %v456_v38, %v892_v5  ;;  %v469_v63 = vmul.f32 %v458_v49, %v915_v15 }
 0x182   : > { %v1037_v57 = vadd.f32 %v589_v56, %v563_v28  ;;  %v1039_v58 = vadd.f32 %v585_v55, %v564_v29  ;;  %v399_v28 = vrot.slane %v398_v18, 4  ;;  %v454_v29 = vmul.f32 0.6931472, %v807_v23 }
 0x183   : > { %v473_v40 = vadd.f32 %v466_v31, %v465_v30  ;;  %v340_v55 = vmul.f32 %v338_v45, %v334_v42  ;;  %v339_v56 = vmul.f32 %v337_v46, %v332_v33  ;;  %v470_v27 = vmul.f32 %v460_v62, %v908_v12 }
 0x184   : > { %604 = vrot.lane.b32.xlu0 %v1037_v57, %s830_s11  ;;  %612 = vrot.lane.b32.xlu1 %v1039_v58, %s830_s11  ;;  %v400_v35 = vmax.f32 %v398_v18, %v399_v28  ;;  %v467_v39 = vmul.f32 %v454_v29, %v880_v0  ;;  %v356_v18 = vrot.slane %v334_v42, 2  ;;  %v360_v30 = vsel %vm359_vm4, %v355_v11, 0.0 }
 0x185   : > { %v341_v7 = vmul.f32 %v339_v56, %v332_v33  ;;  %v342_v10 = vmul.f32 %v340_v55, %v334_v42  ;;  %v377_v46 = vmax.f32 %v375_v32, %v376_v34  ;;  %v417_v42 = vadd.f32 %v899_v8, %v885_v2  ;;  %v631_v2 = vld [vmem:[%s1139_s4] sm:$0x3] }
 0x186   : > { %v401_v48 = vrot.slane %v400_v35, 2  ;;  %v474_v53 = vadd.f32 %v473_v40, %v467_v39  ;;  %v361_v31 = vsel %vm359_vm4, %v356_v18, 0.0  ;;  %v464_v39 = vmul.f32 0.6931472, %v817_v22 }
 0x187   : > { %v343_v29 = vadd.f32 %v342_v10, %v341_v7  ;;  %v471_v40 = vmul.f32 %v462_v26, %v920_v17  ;;  %v362_v45 = vadd.f32 %v361_v31, %v360_v30  ;;  %v429_v55 = vadd.f32 %v902_v9, %v890_v4 }
 0x188   : > { %v402_v61 = vmax.f32 %v400_v35, %v401_v48  ;;  %v475_v3 = vadd.f32 %v474_v53, %v468_v52  ;;  %v395_v35 = vmax.f32 %v393_v59, %v394_v19  ;;  %v472_v49 = vmul.f32 %v464_v39, %v913_v14 }
 0x189   : > { %v435_v56 = vadd.f32 %v911_v13, %v918_v16  ;;  %v642_v59 = vshrl.u32 %v513_v24, 7 }
 0x18a   : > { %v403_v23 = vrot.slane %v402_v61, 1  ;;  %v476_v28 = vadd.f32 %v475_v3, %v469_v63  ;;  %v405_v47 = vsel %vm359_vm4, %v395_v35, 0.0 }
 0x18b   : > { %v643_v60 = vsub.s32 0, %v642_v59 }
 0x18c   : > { %v404_v38 = vmax.f32 %v402_v61, %v403_v23  ;;  %v477_v41 = vadd.f32 %v476_v28, %v470_v27  ;;  %v647_v61 = vsub.s32 1, %v642_v59  ;;  %v426_v59 = vadd.f32 %v913_v14, %v920_v17 }
 0x18d   : > { %v644_v13 = vrot.slane %v631_v2, %v643_v60 }
 0x18e   : > { %v406_v48 = vsel %vm359_vm4, %v404_v38, 0.0  ;;  %v478_v52 = vadd.f32 %v477_v41, %v471_v40  ;;  %v648_v15 = vrot.slane %v631_v2, %v647_v61 }
 0x18f   : > { %v407_v53 = vadd.f32 %v406_v48, %v405_v47 }
 0x190   : > { %v479_v33 = vadd.f32 %v478_v52, %v472_v49 }
 0x1a3   : > { %344 = vadd.xlane.f32.xlu0 %v343_v29 }
 0x1a7   : > { %378 = vmax.xlane.f32.xlu0 %v377_v46 }
 0x1a8   : > { %363 = vadd.xlane.f32.xlu1 %v362_v45 }
 0x1ab   : > { %408 = vadd.xlane.f32.xlu0 %v407_v53 }
 0x1ac   : > { %480 = vadd.xlane.f32.xlu1 %v479_v33 }
 0x1b0   : > { %418 = vadd.xlane.f32.xlu1 %v417_v42 }
 0x1b4   : > { %424 = vadd.xlane.f32.xlu1 %v423_v54 }
 0x1b8   : > { %430 = vadd.xlane.f32.xlu1 %v429_v55 }
 0x1bc   : > { %436 = vadd.xlane.f32.xlu1 %v435_v56 }
 0x1ea   : > { %v607_v8 = vpop.permute.xlu1 %606  ;;  %v599_v12 = vpop.permute.xlu0 %598 }
 0x1eb   : > { %v615_v4 = vsel %vm614_vm6, %v599_v12, %v607_v8  ;;  %v619_v9 = vsel %vm614_vm6, %v607_v8, %v599_v12 }
 0x1ec   : > { %v623_v16 = vadd.f32 %v619_v9, %v998_v36  ;;  %v624_v24 = vadd.f32 %v615_v4, %v1000_v37 }
 0x1ee   : > { %v632_v62 = vand.u32 2147483647, %v623_v16  ;;  %v633_v63 = vand.u32 2147483647, %v624_v24  ;;  %v609_v3 = vpop.permute.xlu1 %608  ;;  %v601_v7 = vpop.permute.xlu0 %600 }
 0x1ef   : > { %v616_v10 = vsel %vm614_vm6, %v601_v7, %v609_v3  ;;  %v620_v11 = vsel %vm614_vm6, %v609_v3, %v601_v7 }
 0x1f0   : > { %v651_v18 = vmul.f32 %v644_v13, %v632_v62  ;;  %v652_v19 = vmul.f32 %v648_v15, %v633_v63  ;;  %v625_v22 = vadd.f32 %v620_v11, %v1011_v43  ;;  %v626_v23 = vadd.f32 %v616_v10, %v1013_v44 }
 0x1f2   : > { %v634_v26 = vand.u32 2147483647, %v625_v22  ;;  %v635_v36 = vand.u32 2147483647, %v626_v23  ;;  %v611_v27 = vpop.permute.xlu1 %610  ;;  %v603_v37 = vpop.permute.xlu0 %602  ;;  %v659_v30 = vadd.f32 %v652_v19, %v651_v18 }
 0x1f3   : > { %v617_v28 = vsel %vm614_vm6, %v603_v37, %v611_v27  ;;  %v621_v29 = vsel %vm614_vm6, %v611_v27, %v603_v37 }
 0x1f4   : > { %v653_v31 = vmul.f32 %v644_v13, %v634_v26  ;;  %v627_v32 = vadd.f32 %v621_v29, %v1024_v50  ;;  %v628_v34 = vadd.f32 %v617_v28, %v1026_v51  ;;  %v654_v35 = vmul.f32 %v648_v15, %v635_v36 }
 0x1f6   : > { %v660_v43 = vadd.f32 %v659_v30, %v653_v31  ;;  %v636_v38 = vand.u32 2147483647, %v627_v32  ;;  %v637_v44 = vand.u32 2147483647, %v628_v34  ;;  %v613_v39 = vpop.permute.xlu1 %612  ;;  %v605_v40 = vpop.permute.xlu0 %604 }
 0x1f7   : > { %v618_v41 = vsel %vm614_vm6, %v605_v40, %v613_v39  ;;  %v622_v45 = vsel %vm614_vm6, %v613_v39, %v605_v40 }
 0x1f8   : > { %v661_v46 = vadd.f32 %v660_v43, %v654_v35  ;;  %v655_v47 = vmul.f32 %v644_v13, %v636_v38  ;;  %v629_v48 = vadd.f32 %v622_v45, %v1037_v57  ;;  %v630_v50 = vadd.f32 %v618_v41, %v1039_v58 }
 0x1f9   : > { %v656_v49 = vmul.f32 %v648_v15, %v637_v44  ;;  %v432_v57 = vadd.f32 %v895_v6, %v883_v1  ;;  %v438_v58 = vadd.f32 %v930_v20, %v934_v21 }
 0x1fa   : > { %v662_v51 = vadd.f32 %v661_v46, %v655_v47  ;;  %v638_v52 = vand.u32 2147483647, %v629_v48  ;;  %v639_v53 = vand.u32 2147483647, %v630_v50 }
 0x1fc   : > { %v657_v33 = vmul.f32 %v644_v13, %v638_v52  ;;  %v663_v42 = vadd.f32 %v662_v51, %v656_v49  ;;  %v658_v54 = vmul.f32 %v648_v15, %v639_v53 }
 0x1fe   : > { %v664_v55 = vadd.f32 %v663_v42, %v657_v33 }
 0x200   : > { %v665_v56 = vadd.f32 %v664_v55, %v658_v54 }
 0x202   : > { %666 = vadd.xlane.f32.xlu0 %v665_v56 }
 0x206   : > { %421 = vadd.xlane.f32.xlu0 %v420_v25 }
 0x20a   : > { %427 = vadd.xlane.f32.xlu0 %v426_v59 }
 0x20e   : > { %433 = vadd.xlane.f32.xlu0 %v432_v57 }
 0x212   : > { %439 = vadd.xlane.f32.xlu0 %v438_v58 }
 0x22c   : > { %v345_v60 = vpop.xlane.xlu0 %344 }
 0x22d   : > { %v346_v61 = vrot.slane %v345_v60, 4 }
 0x22f   : > { %v347_v2 = vadd.f32 %v346_v61, %v345_v60 }
 0x230   : > { %v379_v8 = vpop.xlane.xlu0 %378 }
 0x231   : > { %v348_v12 = vrot.slane %v347_v2, 2  ;;  %v364_v4 = vpop.xlane.xlu1 %363  ;;  %v380_v0 = vrot.slane %v379_v8, 4 }
 0x232   : > { %v365_v5 = vrot.slane %v364_v4, 4 }
 0x233   : > { %v381_v9 = vmax.f32 %v379_v8, %v380_v0  ;;  %v349_v13 = vadd.f32 %v348_v12, %v347_v2 }
 0x234   : > { %v366_v14 = vadd.f32 %v365_v5, %v364_v4  ;;  %v409_v17 = vpop.xlane.xlu0 %408 }
 0x235   : > { %v382_v15 = vrot.slane %v381_v9, 2  ;;  %v350_v16 = vrot.slane %v349_v13, 1  ;;  %v410_v1 = vrot.slane %v409_v17, 4  ;;  %v481_v6 = vpop.xlane.xlu1 %480 }
 0x236   : > { %v367_v24 = vrot.slane %v366_v14, 2  ;;  %v482_v20 = vrot.slane %v481_v6, 4 }
 0x237   : > { %v351_v21 = vadd.f32 %v350_v16, %v349_v13  ;;  %v383_v62 = vmax.f32 %v381_v9, %v382_v15  ;;  %v411_v63 = vadd.f32 %v410_v1, %v409_v17 }
 0x238   : > { %v368_v3 = vadd.f32 %v367_v24, %v366_v14  ;;  %v483_v7 = vadd.f32 %v482_v20, %v481_v6 }
 0x239   : > { %777 = vpush %v351_v21  ;;  %v384_v10 = vrot.slane %v383_v62, 1  ;;  %v412_v11 = vrot.slane %v411_v63, 2  ;;  %v419_v18 = vpop.xlane.xlu1 %418 }
 0x23a   : > { %v369_v19 = vrot.slane %v368_v3, 1  ;;  %v484_v22 = vrot.slane %v483_v7, 2  ;;  %675 = vst [vmem:[%s964_s7] sm:$0xff] %v419_v18 }
 0x23b   : > { %v385_v23 = vmax.f32 %v383_v62, %v384_v10  ;;  %v413_v26 = vadd.f32 %v412_v11, %v411_v63 }
 0x23c   : > { %v370_v36 = vadd.f32 %v369_v19, %v368_v3  ;;  %v485_v27 = vadd.f32 %v484_v22, %v483_v7 }
 0x23d   : > { %v414_v37 = vrot.slane %v413_v26, 1  ;;  %v425_v28 = vpop.xlane.xlu1 %424 }
 0x23e   : > { %779 = vpush %v370_v36  ;;  %v486_v29 = vrot.slane %v485_v27, 1  ;;  %677 = vst [vmem:[%s964_s7 + $0x10] sm:$0xff] %v425_v28 }
 0x23f   : > { %781 = vpush %v385_v23  ;;  %v415_v30 = vadd.f32 %v414_v37, %v413_v26 }
 0x240   : > { %v487_v31 = vadd.f32 %v486_v29, %v485_v27 }
 0x241   : > { %783 = vpush %v415_v30  ;;  %v431_v32 = vpop.xlane.xlu1 %430 }
 0x242   : > { %785 = vpush %v487_v31  ;;  %679 = vst [vmem:[%s964_s7 + $0x20] sm:$0xff] %v431_v32 }
 0x245   : > { %v437_v34 = vpop.xlane.xlu1 %436 }
 0x246   : > { %681 = vst [vmem:[%s964_s7 + $0x30] sm:$0xff] %v437_v34 }
 0x26a   : > { %s778_s19 = spop %777 }
 0x26f   : > { %s780_s20 = spop %779 }
 0x270   : > { %s372_s21 = smul.f32 1.1354603e-05, %s780_s20  ;;  %s782_s22 = spop %781 }
 0x271   : > { %v685_v35 = vstv %s782_s22 }
 0x272   : > { %s373_s23 = sadd.f32 %s778_s19, %s372_s21  ;;  %686 = vst [vmem:[%s964_s7 + $0x41] sm:$0x1] %v685_v35  ;;  %s784_s24 = spop %783 }
 0x273   : > { %v687_v43 = vstv %s784_s24  ;;  %s786_s25 = spop %785 }
 0x274   : > { %v683_v38 = vstv %s373_s23  ;;  %688 = vst [vmem:[%s964_s7 + $0x42] sm:$0x1] %v687_v43  ;;  %v689_v44 = vstv %s786_s25 }
 0x275   : > { %684 = vst [vmem:[%s964_s7 + $0x40] sm:$0x1] %v683_v38  ;;  %690 = vst [vmem:[%s964_s7 + $0x43] sm:$0x1] %v689_v44 }
 0x28b   : > { %v667_v39 = vpop.xlane.xlu0 %666 }
 0x28c   : > { %v668_v40 = vrot.slane %v667_v39, 4 }
 0x28e   : > { %v669_v41 = vadd.f32 %v668_v40, %v667_v39 }
 0x28f   : > { %v422_v45 = vpop.xlane.xlu0 %421 }
 0x290   : > { %v670_v46 = vrot.slane %v669_v41, 2  ;;  %676 = vst [vmem:[%s964_s7 + $0x8] sm:$0xff] %v422_v45 }
 0x292   : > { %v671_v47 = vadd.f32 %v670_v46, %v669_v41 }
 0x293   : > { %v428_v48 = vpop.xlane.xlu0 %427 }
 0x294   : > { %v672_v50 = vrot.slane %v671_v47, 1  ;;  %678 = vst [vmem:[%s964_s7 + $0x18] sm:$0xff] %v428_v48 }
 0x296   : > { %v673_v49 = vadd.f32 %v672_v50, %v671_v47 }
 0x297   : > { %v434_v51 = vpop.xlane.xlu0 %433 }
 0x298   : > { %787 = vpush %v673_v49  ;;  %680 = vst [vmem:[%s964_s7 + $0x28] sm:$0xff] %v434_v51 }
 0x29b   : > { %v440_v52 = vpop.xlane.xlu0 %439 }
 0x29c   : > { %682 = vst [vmem:[%s964_s7 + $0x38] sm:$0xff] %v440_v52 }
 0x2c9   : > { %s788_s26 = spop %787 }
 0x2ca   : > { %v691_v53 = vstv %s788_s26 }
 0x2cb   : > { %692 = vst [vmem:[%s964_s7 + $0x44] sm:$0x1] %v691_v53 }
 0x2cc PF: > { %s15_s18 = sadd.s32 1, %s824_s18  }
 0x2cd   : > { %p12_p4 = scmp.ge.s32.totalorder %s15_s18, 4  }
 0x2cf   :  { %14 = sbr.rel (!%p12_p4) target bundleno = 1 (0x1), region = 73 }

</bundles_post_ra>
